<compile_context>
chip_gen: v6e
topology: v6e:2x2x1
jax: 0.10.0
libtpu: 0.0.40
codegen_flags: <defaults>
</compile_context>

<pallas_src>
import functools

import jax
import jax.numpy as jnp
from jax.experimental import pallas as pl
from jax.experimental.pallas import tpu as pltpu

_LANES = 128


def _round_up(x, m):
    return ((x + m - 1) // m) * m


def _sigmoid(z):
    # EUP-friendly sigmoid: one tanh (EUP slot) + a cheap VPU FMA.
    return 0.5 * jnp.tanh(0.5 * z) + 0.5


def _mlp_kernel(params_ref, x_ref, o_ref):
    # x_ref: (2, rt, 128) -- feature-major, batch dense on sublanes+lanes.
    x0 = x_ref[0]                       # (rt, 128)
    x1 = x_ref[1]                       # (rt, 128)

    # 13 scalars from SMEM: w1 (2x3 row-major), b1 (3), w2 (3), b2 (1).
    w1_00 = params_ref[0]
    w1_01 = params_ref[1]
    w1_02 = params_ref[2]
    w1_10 = params_ref[3]
    w1_11 = params_ref[4]
    w1_12 = params_ref[5]
    b1_0 = params_ref[6]
    b1_1 = params_ref[7]
    b1_2 = params_ref[8]
    w2_0 = params_ref[9]
    w2_1 = params_ref[10]
    w2_2 = params_ref[11]
    b2_0 = params_ref[12]

    # Layer 1 (2 -> 3) as scalar-broadcast FMAs on the VPU, exact f32.
    h0 = _sigmoid(x0 * w1_00 + x1 * w1_10 + b1_0)
    h1 = _sigmoid(x0 * w1_01 + x1 * w1_11 + b1_1)
    h2 = _sigmoid(x0 * w1_02 + x1 * w1_12 + b1_2)

    # Layer 2 (3 -> 1).
    y = _sigmoid(h0 * w2_0 + h1 * w2_1 + h2 * w2_2 + b2_0)
    o_ref[...] = y.astype(o_ref.dtype)


def net_forward(x, w1, b1, w2, b2, *, block_rows=1024):
    """Fused forward of Net: sigmoid(sigmoid(x @ W1 + b1) @ W2 + b2)."""
    B = x.shape[0]
    nb = pl.cdiv(B, _LANES)                                # rows of 128 batch elems
    # Tile of `rt` rows (rt*128 batch elems / step); keep >=2 grid steps when
    # possible (v7x megacore) and cap the tile at ~1 MiB of input per step.
    rt = max(8, min(block_rows, _round_up(pl.cdiv(nb, 2), 8)))
    nb_pad = _round_up(nb, rt)
    b_pad = nb_pad * _LANES
    grid = (nb_pad // rt,)

    x = x.astype(jnp.float32)
    if b_pad != B:
        x = jnp.pad(x, ((0, b_pad - B), (0, 0)))
    # (B_pad, 2) -> (2, nb_pad, 128): batch becomes the (sublane, lane) axes.
    x3 = x.T.reshape(2, nb_pad, _LANES)

    # Pack all 13 parameters into one SMEM scalar vector.
    params = jnp.concatenate([
        w1.reshape(-1), b1.reshape(-1), w2.reshape(-1), b2.reshape(-1),
    ]).astype(jnp.float32)                                  # (13,)

    cost = pl.CostEstimate(
        flops=19 * b_pad,
        transcendentals=4 * b_pad,
        bytes_accessed=12 * b_pad + 13 * 4,
    )

    out = pl.pallas_call(
        _mlp_kernel,
        out_shape=jax.ShapeDtypeStruct((nb_pad, _LANES), jnp.float32),
        grid=grid,
        in_specs=[
            pl.BlockSpec(memory_space=pltpu.MemorySpace.SMEM),   # params (13,)
            pl.BlockSpec((2, rt, _LANES), lambda i: (0, i, 0)),  # x, lane-dense
        ],
        out_specs=pl.BlockSpec((rt, _LANES), lambda i: (i, 0)),  # lane-dense out
        compiler_params=pltpu.CompilerParams(
            dimension_semantics=("parallel",)),
        cost_estimate=cost,
    )(params, x3)

    # (nb_pad, 128) is batch-contiguous; trim the pad and restore (B, 1).
    return out.reshape(-1)[:B].reshape(B, 1)


def reference_forward(x, w1, b1, w2, b2):
    h = jax.nn.sigmoid(x @ w1 + b1)
    return jax.nn.sigmoid(h @ w2 + b2)


if __name__ == "__main__":
    key = jax.random.PRNGKey(0)
    k_x, k_w1, k_b1, k_w2, k_b2 = jax.random.split(key, 5)

    # Deterministic parameter init (PyTorch-style uniform(-1/sqrt(fan_in), +)).
    lim1 = 1.0 / jnp.sqrt(2.0)
    lim2 = 1.0 / jnp.sqrt(3.0)
    w1 = jax.random.uniform(k_w1, (2, 3), jnp.float32, -lim1, lim1)
    b1 = jax.random.uniform(k_b1, (3,), jnp.float32, -lim1, lim1)
    w2 = jax.random.uniform(k_w2, (3, 1), jnp.float32, -lim2, lim2)
    b2 = jax.random.uniform(k_b2, (1,), jnp.float32, -lim2, lim2)

    # Case 1: multi-step grid (4096 rows -> 4 steps of 8x128 batch elems).
    fwd = jax.jit(functools.partial(net_forward, block_rows=8))
    B1 = 4096
    x1 = jax.random.normal(k_x, (B1, 2), dtype=jnp.float32)
    out1 = jax.block_until_ready(fwd(x1, w1, b1, w2, b2))
    ref1 = reference_forward(x1, w1, b1, w2, b2)
    assert out1.shape == (B1, 1)
    assert jnp.allclose(out1, ref1, atol=1e-5, rtol=1e-5), "mismatch (B=4096)"

    # Case 2: odd batch exercises the ragged pad / trim path.
    B2 = 137
    x2 = jax.random.normal(jax.random.PRNGKey(1), (B2, 2), dtype=jnp.float32)
    out2 = jax.block_until_ready(jax.jit(net_forward)(x2, w1, b1, w2, b2))
    ref2 = reference_forward(x2, w1, b1, w2, b2)
    assert out2.shape == (B2, 1)
    assert jnp.allclose(out2, ref2, atol=1e-5, rtol=1e-5), "mismatch (B=137)"

    print("KERNEL_OK")
</pallas_src>

<mosaic_0001>
module attributes {stable_mosaic.version = 11 : i64} {
  func.func @_mlp_kernel(%arg0: i32, %arg1: memref<13xf32, #tpu.memory_space<smem>>, %arg2: memref<2x8x128xf32, #tpu.memory_space<vmem>>, %arg3: memref<8x128xf32, #tpu.memory_space<vmem>>) attributes {dimension_semantics = [#tpu.dimension_semantics<parallel>], iteration_bounds = array<i64: 4>, scalar_prefetch = 0 : i64, scratch_operands = 0 : i64, tpu.core_type = #tpu.core_type<tc>, window_params = [{transform_indices = @transform_0, window_bounds = array<i64: 13>}, {transform_indices = @transform_1, window_bounds = array<i64: 2, 8, 128>}, {transform_indices = @transform_2, window_bounds = array<i64: 8, 128>}]} {
    %c0 = arith.constant 0 : index
    %c0_0 = arith.constant 0 : index
    %c0_1 = arith.constant 0 : index
    %0 = vector.load %arg2[%c0, %c0_0, %c0_1] : memref<2x8x128xf32, #tpu.memory_space<vmem>>, vector<1x8x128xf32>
    %1 = vector.shape_cast %0 : vector<1x8x128xf32> to vector<8x128xf32>
    %c1 = arith.constant 1 : index
    %c0_2 = arith.constant 0 : index
    %c0_3 = arith.constant 0 : index
    %2 = vector.load %arg2[%c1, %c0_2, %c0_3] : memref<2x8x128xf32, #tpu.memory_space<vmem>>, vector<1x8x128xf32>
    %3 = vector.shape_cast %2 : vector<1x8x128xf32> to vector<8x128xf32>
    %c0_4 = arith.constant 0 : index
    %4 = memref.load %arg1[%c0_4] : memref<13xf32, #tpu.memory_space<smem>>
    %c1_5 = arith.constant 1 : index
    %5 = memref.load %arg1[%c1_5] : memref<13xf32, #tpu.memory_space<smem>>
    %c2 = arith.constant 2 : index
    %6 = memref.load %arg1[%c2] : memref<13xf32, #tpu.memory_space<smem>>
    %c3 = arith.constant 3 : index
    %7 = memref.load %arg1[%c3] : memref<13xf32, #tpu.memory_space<smem>>
    %c4 = arith.constant 4 : index
    %8 = memref.load %arg1[%c4] : memref<13xf32, #tpu.memory_space<smem>>
    %c5 = arith.constant 5 : index
    %9 = memref.load %arg1[%c5] : memref<13xf32, #tpu.memory_space<smem>>
    %c6 = arith.constant 6 : index
    %10 = memref.load %arg1[%c6] : memref<13xf32, #tpu.memory_space<smem>>
    %c7 = arith.constant 7 : index
    %11 = memref.load %arg1[%c7] : memref<13xf32, #tpu.memory_space<smem>>
    %c8 = arith.constant 8 : index
    %12 = memref.load %arg1[%c8] : memref<13xf32, #tpu.memory_space<smem>>
    %c9 = arith.constant 9 : index
    %13 = memref.load %arg1[%c9] : memref<13xf32, #tpu.memory_space<smem>>
    %c10 = arith.constant 10 : index
    %14 = memref.load %arg1[%c10] : memref<13xf32, #tpu.memory_space<smem>>
    %c11 = arith.constant 11 : index
    %15 = memref.load %arg1[%c11] : memref<13xf32, #tpu.memory_space<smem>>
    %c12 = arith.constant 12 : index
    %16 = memref.load %arg1[%c12] : memref<13xf32, #tpu.memory_space<smem>>
    %17 = vector.broadcast %4 : f32 to vector<8x128xf32>
    %18 = arith.mulf %1, %17 : vector<8x128xf32>
    %19 = vector.broadcast %7 : f32 to vector<8x128xf32>
    %20 = arith.mulf %3, %19 : vector<8x128xf32>
    %21 = arith.addf %18, %20 : vector<8x128xf32>
    %22 = vector.broadcast %10 : f32 to vector<8x128xf32>
    %23 = arith.addf %21, %22 : vector<8x128xf32>
    %cst = arith.constant 5.000000e-01 : f32
    %24 = vector.broadcast %cst : f32 to vector<8x128xf32>
    %25 = arith.mulf %24, %23 : vector<8x128xf32>
    %26 = math.tanh %25 : vector<8x128xf32>
    %cst_6 = arith.constant 5.000000e-01 : f32
    %27 = vector.broadcast %cst_6 : f32 to vector<8x128xf32>
    %28 = arith.mulf %27, %26 : vector<8x128xf32>
    %cst_7 = arith.constant 5.000000e-01 : f32
    %29 = vector.broadcast %cst_7 : f32 to vector<8x128xf32>
    %30 = arith.addf %28, %29 : vector<8x128xf32>
    %31 = vector.broadcast %5 : f32 to vector<8x128xf32>
    %32 = arith.mulf %1, %31 : vector<8x128xf32>
    %33 = vector.broadcast %8 : f32 to vector<8x128xf32>
    %34 = arith.mulf %3, %33 : vector<8x128xf32>
    %35 = arith.addf %32, %34 : vector<8x128xf32>
    %36 = vector.broadcast %11 : f32 to vector<8x128xf32>
    %37 = arith.addf %35, %36 : vector<8x128xf32>
    %cst_8 = arith.constant 5.000000e-01 : f32
    %38 = vector.broadcast %cst_8 : f32 to vector<8x128xf32>
    %39 = arith.mulf %38, %37 : vector<8x128xf32>
    %40 = math.tanh %39 : vector<8x128xf32>
    %cst_9 = arith.constant 5.000000e-01 : f32
    %41 = vector.broadcast %cst_9 : f32 to vector<8x128xf32>
    %42 = arith.mulf %41, %40 : vector<8x128xf32>
    %cst_10 = arith.constant 5.000000e-01 : f32
    %43 = vector.broadcast %cst_10 : f32 to vector<8x128xf32>
    %44 = arith.addf %42, %43 : vector<8x128xf32>
    %45 = vector.broadcast %6 : f32 to vector<8x128xf32>
    %46 = arith.mulf %1, %45 : vector<8x128xf32>
    %47 = vector.broadcast %9 : f32 to vector<8x128xf32>
    %48 = arith.mulf %3, %47 : vector<8x128xf32>
    %49 = arith.addf %46, %48 : vector<8x128xf32>
    %50 = vector.broadcast %12 : f32 to vector<8x128xf32>
    %51 = arith.addf %49, %50 : vector<8x128xf32>
    %cst_11 = arith.constant 5.000000e-01 : f32
    %52 = vector.broadcast %cst_11 : f32 to vector<8x128xf32>
    %53 = arith.mulf %52, %51 : vector<8x128xf32>
    %54 = math.tanh %53 : vector<8x128xf32>
    %cst_12 = arith.constant 5.000000e-01 : f32
    %55 = vector.broadcast %cst_12 : f32 to vector<8x128xf32>
    %56 = arith.mulf %55, %54 : vector<8x128xf32>
    %cst_13 = arith.constant 5.000000e-01 : f32
    %57 = vector.broadcast %cst_13 : f32 to vector<8x128xf32>
    %58 = arith.addf %56, %57 : vector<8x128xf32>
    %59 = vector.broadcast %13 : f32 to vector<8x128xf32>
    %60 = arith.mulf %30, %59 : vector<8x128xf32>
    %61 = vector.broadcast %14 : f32 to vector<8x128xf32>
    %62 = arith.mulf %44, %61 : vector<8x128xf32>
    %63 = arith.addf %60, %62 : vector<8x128xf32>
    %64 = vector.broadcast %15 : f32 to vector<8x128xf32>
    %65 = arith.mulf %58, %64 : vector<8x128xf32>
    %66 = arith.addf %63, %65 : vector<8x128xf32>
    %67 = vector.broadcast %16 : f32 to vector<8x128xf32>
    %68 = arith.addf %66, %67 : vector<8x128xf32>
    %cst_14 = arith.constant 5.000000e-01 : f32
    %69 = vector.broadcast %cst_14 : f32 to vector<8x128xf32>
    %70 = arith.mulf %69, %68 : vector<8x128xf32>
    %71 = math.tanh %70 : vector<8x128xf32>
    %cst_15 = arith.constant 5.000000e-01 : f32
    %72 = vector.broadcast %cst_15 : f32 to vector<8x128xf32>
    %73 = arith.mulf %72, %71 : vector<8x128xf32>
    %cst_16 = arith.constant 5.000000e-01 : f32
    %74 = vector.broadcast %cst_16 : f32 to vector<8x128xf32>
    %75 = arith.addf %73, %74 : vector<8x128xf32>
    %c0_17 = arith.constant 0 : index
    %c0_18 = arith.constant 0 : index
    %76 = vector.load %arg3[%c0_17, %c0_18] : memref<8x128xf32, #tpu.memory_space<vmem>>, vector<8x128xf32>
    tpu.vector_store %arg3[%c0_17, %c0_18], %75 {strides = array<i32>} : memref<8x128xf32, #tpu.memory_space<vmem>>, vector<8x128xf32>,
    return
  }
  func.func @transform_0(%arg0: i32) -> i32 {
    %c0_i32 = arith.constant 0 : i32
    %c0_i32_0 = arith.constant 0 : i32
    return %c0_i32 : i32
  }
  func.func @transform_1(%arg0: i32) -> (i32, i32, i32) {
    %c0_i32 = arith.constant 0 : i32
    %c0_i32_0 = arith.constant 0 : i32
    %c0_i32_1 = arith.constant 0 : i32
    return %c0_i32, %arg0, %c0_i32_0 : i32, i32, i32
  }
  func.func @transform_2(%arg0: i32) -> (i32, i32) {
    %c0_i32 = arith.constant 0 : i32
    %c0_i32_0 = arith.constant 0 : i32
    return %arg0, %c0_i32 : i32, i32
  }
}

</mosaic_0001>

<bundles_post_ra>
// kernel: net_forward.1
= control target key start
LH: loop header
LB: loop body
LE: loop exit
PB: predicated region body
PF: predicated region fallthrough
CT: control target
= control target key end

     0   :  { %7 = vsyncpa [#allocation4], 0  ;;  %s657_s0 = inlined_call_operand.vmem [shape: f32[13], index: 0, kind: input, shape index: {}]   ;;  %s658_s1 = inlined_call_operand.vmem [shape: f32[2,32,128], index: 1, kind: input, shape index: {}]   ;;  %s659_s2 = inlined_call_operand.hbm [shape: f32[32,128], index: 2, kind: output, shape index: {}]  }
   0x1   :  { %8 = vsyncpa [#allocation3], 0 }
   0x2   :  { %10 = vsyncpa [#allocation3 + $0x1], 0  ;;  %s533_s9 = smov 0   ;;  %s535_s10 = smov 0  }
   0x3   :  { %s537_s11 = smov 0   ;;  %s539_s12 = smov 0  }
   0x4 LB: > { %s554_s13 = sadd.s32 4294967295, %s514_s12   ;;  %s350_s14 = sadd.s32 4294967294, %s514_s12   ;;  %s514_s12 = sphi %s539_s12, %s670_s12   ;;  %s510_s11 = sphi %s537_s11, %s669_s11   ;;  %s506_s10 = sphi %s535_s10, %s668_s10   ;;  %s502_s9 = sphi %s533_s9, %s667_s9  }
   0x5   : > { %s558_s15 = sadd.s32 1, %s514_s12   ;;  %s44_s16 = sadd.s32 1, %s510_s11 }
   0x6   : > { %s41_s17 = ssub.s32 %s514_s12, %s558_s15  ;;  %p51_p0 = scmp.ne.s32.totalorder %s510_s11, %s506_s10 }
   0x7   : > { %p42_p1 = scmp.eq.s32.totalorder %s41_s17, 0  ;;  %p52_p2 = scmp.eq.s32.totalorder %s514_s12, 0 }
   0x8   : > { %p81_p3 = scmp.eq.s32.totalorder %s554_s13, 3  ;;  %p86_p4 = scmp.ne.s32.totalorder %s506_s10, %s502_s9 }
   0x9   : > { %s570_s18 = scalar_select %p42_p1, %s510_s11, %s44_s16  }
   0xa   : > { %p572_p5 = por %p52_p2, %p51_p0  ;;  %p576_p6 = por %p81_p3, %p51_p0 }
   0xb   : > { %p87_p7 = scmp.eq.s32.totalorder %s350_s14, 3  ;;  %p351_p8 = scmp.ge.s32.totalorder %s514_s12, 1 }
   0xc   : > { %s662_s20 = scalar_select %p576_p6, 1, 0 }
   0xd   : > { %p94_p9 = scmp.lt.s32.totalorder %s514_s12, 5  ;;  %p582_p10 = por %p87_p7, %p86_p4 }
   0xe   : > { %p391_p11 = scmp.eq.s32.totalorder %s554_s13, 0  ;;  %s107_s25 = sshll.u32 %s657_s0, 4  ;;  %s108_s25 = int_to_ptr.vmem [resolvable:$true] %s107_s25 }
   0xf   : > { %s663_s21 = scalar_select %p582_p10, 1, 0 }
  0x10   : > { %p587_p12 = pnand %p351_p8, %p94_p9  ;;  %s435_s26 = scalar_lea.vmem %s108_s25, 16 }
  0x11   : > { %p436_p1 = scmp.ne.s32.totalorder %s108_s25, %s435_s26  ;;  %p443_p7 = scmp.lt.s32.totalorder %s108_s25, %s108_s25 }
  0x12   : > { %p383_p13 = pneg %p587_p12  ;;  %p444_p8 = scmp.lt.s32.totalorder %s435_s26, %s435_s26 }
  0x14   : > { %p384_p0 = pnand %p391_p11, %p383_p13  ;;  %p445_p9 = por %p444_p8, %p443_p7 }
  0x16   : > { %p437_p2 = pneg %p384_p0 }
  0x18   : > { %p438_p3 = pnand %p437_p2, %p436_p1 }
  0x1a   : > { %p439_p4 = pneg %p438_p3 }
  0x1c   : > { %p446_p10 = pnand %p445_p9, %p439_p4 }
  0x1e   : > { %449 = shalt.err (!%p446_p10)
}
  0x1f   : > { %s516_s27 = smov [#allocation2]   ;;  %p353_p6 = scmp.ge.s32.totalorder %s514_s12, 4 }
  0x20   : > { %386 = dma.vmem_to_smem (!%p384_p0), %s108_s25, 16, %s516_s27, [#allocation4]  }
  0x21   : > { %114 = sbr.rel (%p353_p6) target bundleno = 44 (0x2c), region = 20 }
  0x26   : > { %117 = sbr.rel (!%p572_p5) target bundleno = 44 (0x2c), region = 24  ;;  %s119_s28 = sand.u32 (%p572_p5), 1, %s510_s11  }
  0x27   : > { %s355_s29 = sshll.u32 (%p572_p5), %s514_s12, 3  ;;  %s354_s30 = sshll.u32 (%p572_p5), %s119_s28, 4 }
  0x28   : > { %s123_s5 = scalar_lea.vmem (%p572_p5), %s658_s1, %s355_s29  ;;  %s121_s6 = scalar_lea.vmem (%p572_p5), [#allocation5], %s354_s30 }
  0x29   : > { %v154_v0 = vld [vmem:[%s123_s5] sm:$0xff] (%p572_p5) }
  0x2a   : > { %v156_v1 = vld [vmem:[%s123_s5 + $0x20] sm:$0xff] (%p572_p5)  ;;  %155 = vst [vmem:[%s121_s6] sm:$0xff] (%p572_p5), %v154_v0 }
  0x2b   : > { %157 = vst [vmem:[%s121_s6 + $0x8] sm:$0xff] %v156_v1 }
  0x2c PF: > { %166 = sbr.rel (%p587_p12) target bundleno = 132 (0x84), region = 62 }
  0x31   : > { %493 = dma.done.wait (%p391_p11), [#allocation4], 16  }
  0x32   : > { %495 = vsyncadd (%p391_p11), [#allocation4], 4294967280  ;;  %s613_s7 = sand.u32 1, %s506_s10  }
  0x33   : > { %s358_s8 = sshll.u32 %s613_s7, 4 }
  0x34   : > { %s175_s14 = scalar_lea.vmem [#allocation5], %s358_s8 }
  0x35   : > { %179 = sfence }
  0x36   : > { %s198_s16 = sld [smem:[#allocation2]]  ;;  %v195_v2 = vld [vmem:[%s175_s14] sm:$0xff]  ;;  %v360_v4 = vld [vmem:[%s175_s14 + $0x8] sm:$0xff]  ;;  %s359_s4 = sshll.u32 %s613_s7, 3 }
  0x37   : > { %s361_s17 = sld [smem:[#allocation2 + $0x1]]  ;;  %s194_s5 = scalar_lea.vmem [#allocation6], %s359_s4 }
  0x38   : > { %s362_s19 = sld [smem:[#allocation2 + $0x2]]  ;;  %s273_s6 = sshll.u32 %s194_s5, 4  ;;  %s618_s6 = int_to_ptr.vmem [resolvable:$true] %s273_s6 }
  0x39   : > { %s363_s23 = sld [smem:[#allocation2 + $0x3]]  ;;  %s374_s8 = sshll.u32 %s554_s13, 7 }
  0x3a   : > { %s364_s24 = sld [smem:[#allocation2 + $0x4]]  ;;  %p665_p6 = scmp.ne.s32.totalorder %s662_s20, 0 }
  0x3b   : > { %s365_s22 = sld [smem:[#allocation2 + $0x5]] }
  0x3c   : > { %s366_s25 = sld [smem:[#allocation2 + $0x6]]  ;;  %v211_v3 = vstv %s198_s16 }
  0x3d   : > { %s367_s26 = sld [smem:[#allocation2 + $0x7]]  ;;  %v222_v5 = vstv %s361_s17  ;;  %v212_v6 = vmul.f32 %v211_v3, %v195_v2  ;;  %s271_s17 = scalar_lea.hbm %s659_s2, %s374_s8 }
  0x3e   : > { %s368_s27 = sld [smem:[#allocation2 + $0x8]]  ;;  %v233_v7 = vstv %s362_s19  ;;  %v223_v9 = vmul.f32 %v222_v5, %v195_v2  ;;  %s260_s19 = scalar_lea.sflag [#allocation3], %s613_s7 }
  0x3f   : > { %v213_v8 = vstv %s363_s23  ;;  %v234_v12 = vmul.f32 %v233_v7, %v195_v2  ;;  %s369_s28 = sld [smem:[#allocation2 + $0x9]]  ;;  %s450_s23 = scalar_lea.vmem %s618_s6, 128 }
  0x40   : > { %v214_v10 = vmul.f32 %v360_v4, %v213_v8  ;;  %v224_v11 = vstv %s364_s24  ;;  %s370_s29 = sld [smem:[#allocation2 + $0xa]]  ;;  %p451_p5 = scmp.ne.s32.totalorder %s618_s6, %s450_s23 }
  0x41   : > { %v225_v13 = vmul.f32 %v360_v4, %v224_v11  ;;  %v235_v14 = vstv %s365_s22  ;;  %s371_s30 = sld [smem:[#allocation2 + $0xb]]  ;;  %s517_s24 = smov [#allocation6]  }
  0x42   : > { %v215_v15 = vadd.f32 %v214_v10, %v212_v6  ;;  %v216_v16 = vstv %s366_s25  ;;  %v236_v17 = vmul.f32 %v360_v4, %v235_v14  ;;  %s372_s3 = sld [smem:[#allocation2 + $0xc]]  ;;  %p452_p10 = pnand %p451_p5, %p665_p6 }
  0x43   : > { %v226_v18 = vadd.f32 %v225_v13, %v223_v9  ;;  %v227_v19 = vstv %s367_s26  ;;  %s454_s13 = sshll.u32 %s517_s24, 4  ;;  %s455_s13 = int_to_ptr.vmem [resolvable:$false] %s454_s13 }
  0x44   : > { %v217_v20 = vadd.f32 %v216_v16, %v215_v15  ;;  %v237_v21 = vadd.f32 %v236_v17, %v234_v12  ;;  %v238_v22 = vstv %s368_s27  ;;  %p453_p11 = pneg %p452_p10  ;;  %s456_s22 = scalar_lea.vmem %s455_s13, 256 }
  0x45   : > { %v228_v23 = vadd.f32 %v227_v19, %v226_v18  ;;  %v244_v33 = vstv %s369_s28  ;;  %p457_p12 = scmp.lt.s32.totalorder %s618_s6, %s455_s13  ;;  %p458_p13 = scmp.lt.s32.totalorder %s456_s22, %s450_s23 }
  0x46   : > { %v218_v24 = vmul.f32 0.5, %v217_v20  ;;  %v239_v25 = vadd.f32 %v238_v22, %v237_v21  ;;  %v246_v36 = vstv %s370_s29 }
  0x47   : > { %v229_v26 = vmul.f32 0.5, %v228_v23  ;;  %v249_v38 = vstv %s371_s30  ;;  %p459_p0 = por %p458_p13, %p457_p12 }
  0x48   : > { %427 = vtanh.f32 %v218_v24  ;;  %v240_v27 = vmul.f32 0.5, %v239_v25  ;;  %v252_v44 = vstv %s372_s3 }
  0x49   : > { %429 = vtanh.f32 %v229_v26  ;;  %p460_p1 = pnand %p459_p0, %p453_p11 }
  0x4a   : > { %431 = vtanh.f32 %v240_v27 }
  0x55   : > { %v428_v28 = vpop.eup %427 }
  0x56   : > { %v430_v29 = vpop.eup %429  ;;  %v220_v30 = vmul.f32 0.5, %v428_v28 }
  0x57   : > { %v432_v31 = vpop.eup %431  ;;  %v231_v32 = vmul.f32 0.5, %v430_v29 }
  0x58   : > { %v221_v34 = vadd.f32 0.5, %v220_v30  ;;  %v242_v35 = vmul.f32 0.5, %v432_v31 }
  0x59   : > { %v232_v37 = vadd.f32 0.5, %v231_v32 }
  0x5a   : > { %v243_v39 = vadd.f32 0.5, %v242_v35  ;;  %v245_v40 = vmul.f32 %v244_v33, %v221_v34 }
  0x5b   : > { %v247_v41 = vmul.f32 %v246_v36, %v232_v37 }
  0x5c   : > { %v250_v42 = vmul.f32 %v249_v38, %v243_v39 }
  0x5d   : > { %v248_v43 = vadd.f32 %v247_v41, %v245_v40 }
  0x5f   : > { %v251_v45 = vadd.f32 %v250_v42, %v248_v43 }
  0x61   : > { %v253_v46 = vadd.f32 %v252_v44, %v251_v45 }
  0x63   : > { %v254_v47 = vmul.f32 0.5, %v253_v46 }
  0x65   : > { %433 = vtanh.f32 %v254_v47 }
  0x72   : > { %v434_v48 = vpop.eup %433 }
  0x73   : > { %v256_v49 = vmul.f32 0.5, %v434_v48 }
  0x75   : > { %v257_v50 = vadd.f32 0.5, %v256_v49 }
  0x77   : > { %258 = vst [vmem:[%s194_s5] sm:$0xff] %v257_v50 }
  0x78   : > { %463 = shalt.err (!%p460_p1)
}
  0x79   : > { %s464_s25 = scalar_lea.hbm %s271_s17, 128  ;;  %s468_s27 = scalar_lea.hbm %s659_s2, 512 }
  0x7a   : > { %p465_p2 = scmp.ne.s32.totalorder %s271_s17, %s464_s25  ;;  %p469_p7 = scmp.lt.s32.totalorder %s271_s17, %s659_s2 }
  0x7b   : > { %p470_p8 = scmp.lt.s32.totalorder %s468_s27, %s464_s25 }
  0x7c   : > { %p466_p3 = pnand %p465_p2, %p665_p6 }
  0x7d   : > { %p471_p9 = por %p470_p8, %p469_p7 }
  0x7e   : > { %p467_p4 = pneg %p466_p3 }
  0x80   : > { %p472_p5 = pnand %p471_p9, %p467_p4 }
  0x82   : > { %475 = shalt.err (!%p472_p5)
}
  0x83   : > { %381 = dma.vmem_to_hbm [thread:$0]  (%p665_p6), %s618_s6, 128, %s271_s17, %s260_s19  }
  0x84 PF: > { %p393_p10 = scmp.ge.s32.totalorder %s514_s12, 2  ;;  %s285_s30 = sand.u32 1, %s502_s9  }
  0x85   : > { %p666_p11 = scmp.ne.s32.totalorder %s663_s21, 0  ;;  %s286_s3 = scalar_lea.sflag [#allocation3], %s285_s30 }
  0x87   : > { %p388_p12 = pnand %p393_p10, %p666_p11 }
  0x89   : > { %p389_p13 = pneg %p388_p12 }
  0x8b   : > { %497 = dma.done.wait (%p389_p13), %s286_s3, 128  }
  0x8c   : > { %499 = vsyncadd (%p389_p13), %s286_s3, 4294967168  ;;  %p13_p0 = scmp.ge.s32.totalorder %s558_s15, 6   ;;  %s667_s9 = smov %s506_s10 }
  0x8d   : > { %s668_s10 = smov %s510_s11  ;;  %s669_s11 = smov %s570_s18 }
  0x8e   : > { %s670_s12 = smov %s558_s15  ;;  %15 = sbr.rel (!%p13_p0) target bundleno = 4 (0x4), region = 112 }
  0x93   :  { %291 = vsyncpa [#allocation3], 1 }
  0x94   :  { %293 = vsyncpa [#allocation3 + $0x1], 1 }
  0x95   :  { %294 = vsyncpa [#allocation4], 1 }
  0x96   :  { %296 = vsyncpa [#allocation4 + $0x1], 1 }

</bundles_post_ra>
